<compile_context>
chip_gen: v7x
topology: tpu7x:2x2x1
jax: 0.10.0
libtpu: 0.0.40
codegen_flags: <defaults>
</compile_context>

<pallas_src>
import functools
import math

import jax
import jax.numpy as jnp
from jax import lax
from jax.experimental import pallas as pl
from jax.experimental.pallas import tpu as pltpu


def _round_up(x, m):
    return (x + m - 1) // m * m


_DEFAULT_ROW_TILE = {4: 256, 5: 256, 6: 1024, 7: 512}


def _tpu_hw():
    """Best-effort (generation, vmem_capacity_bytes) with conservative fallbacks."""
    gen = 6
    try:
        kind = jax.devices()[0].device_kind.lower()
        for g in (7, 6, 5, 4):
            if f"v{g}" in kind:
                gen = g
                break
    except Exception:
        pass
    vmem = None
    try:
        vmem = int(pltpu.get_tpu_info().vmem_capacity_bytes)
    except Exception:
        vmem = None
    if not vmem or vmem <= 0:
        vmem = (64 << 20) if gen >= 7 else (128 << 20)
    return gen, vmem


def _gelu_exact(h):
    # Exact erf formulation: matches torch.nn.GELU() default.
    return 0.5 * h * (1.0 + lax.erf(h * (1.0 / math.sqrt(2.0))))


def _gelu_tanh(h):
    c = math.sqrt(2.0 / math.pi)
    return 0.5 * h * (1.0 + jnp.tanh(c * (h + 0.044715 * h * h * h)))


def _ffn_kernel_inplace(x_ref, w1_ref, b1_ref, w2_ref, b2_ref, o_ref, *, approx_gelu):
    # f32 output path: accumulate straight into the VMEM-resident output block
    # (out BlockSpec ignores the hidden grid axis, so o_ref stays resident across hk).
    hk = pl.program_id(1)

    xv = x_ref[...]
    if xv.dtype != w1_ref.dtype:           # static at trace time
        xv = xv.astype(w1_ref.dtype)
    h = jnp.dot(xv, w1_ref[...], preferred_element_type=jnp.float32)
    h = h + b1_ref[...].astype(jnp.float32)
    h = _gelu_tanh(h) if approx_gelu else _gelu_exact(h)
    # Dropout(p=0.0) is identity at inference -> no-op.
    # TODO(synk): non-zero dropout would need pltpu.prng_seed/prng_random_bits masking.
    contrib = jnp.dot(h.astype(w2_ref.dtype), w2_ref[...],
                      preferred_element_type=jnp.float32)

    @pl.when(hk == 0)
    def _():
        o_ref[...] = contrib + b2_ref[...].astype(jnp.float32)

    @pl.when(hk > 0)
    def _():
        o_ref[...] += contrib


def _ffn_kernel_scratch(x_ref, w1_ref, b1_ref, w2_ref, b2_ref, o_ref, acc_ref, *, approx_gelu):
    # Non-f32 output path: f32 scratch accumulator over the hidden axis.
    hk = pl.program_id(1)

    @pl.when(hk == 0)
    def _():
        acc_ref[...] = jnp.zeros_like(acc_ref)

    xv = x_ref[...]
    if xv.dtype != w1_ref.dtype:
        xv = xv.astype(w1_ref.dtype)
    h = jnp.dot(xv, w1_ref[...], preferred_element_type=jnp.float32)
    h = h + b1_ref[...].astype(jnp.float32)
    h = _gelu_tanh(h) if approx_gelu else _gelu_exact(h)
    acc_ref[...] += jnp.dot(h.astype(w2_ref.dtype), w2_ref[...],
                            preferred_element_type=jnp.float32)

    @pl.when(hk == pl.num_programs(1) - 1)
    def _():
        o_ref[...] = (acc_ref[...] + b2_ref[...].astype(jnp.float32)).astype(o_ref.dtype)


def make_feed_forward(w1, b1, w2, b2, *, row_tile=None, hidden_tile=None,
                      compute_dtype=None, approx_gelu=False):
    """Pads (and optionally re-casts) the weights ONCE and returns fn(x) -> out.

    w1: (dim, hidden)  b1: (hidden,)  w2: (hidden, dim)  b2: (dim,)
    compute_dtype: e.g. jnp.bfloat16 to run the MXU in bf16 (numerics change slightly).
    approx_gelu: tanh-approximate GELU (EUP) instead of exact erf (default: exact).
    """
    dim, hidden = w1.shape
    assert w2.shape == (hidden, dim) and b1.shape == (hidden,) and b2.shape == (dim,)

    gen, vmem_cap = _tpu_hw()
    # Never exceed physical/scoped VMEM (esp. v7x's 64 MiB); leave headroom for the compiler.
    vmem_budget = max(32 << 20, vmem_cap - (16 << 20))

    # Lane-dense channel padding; prefer 256-alignment on the 2x256x256 MXUs (v6e/v7x).
    chan_align = 256 if (gen >= 6 and dim > 128) else 128
    dim_p = _round_up(dim, chan_align)

    if hidden_tile is None:
        hidden_tile = 1024
    hidden_tile = _round_up(min(hidden_tile, _round_up(hidden, 128)), 128)

    if row_tile is None:
        row_tile = _DEFAULT_ROW_TILE.get(gen, 512)
    row_tile = _round_up(row_tile, 8)

    w_bytes = (jnp.dtype(compute_dtype).itemsize if compute_dtype is not None
               else jnp.dtype(w1.dtype).itemsize)
    a_bytes = jnp.dtype(w1.dtype).itemsize
    guess_scratch = jnp.dtype(w1.dtype) != jnp.float32

    def _est(rt, ht):
        return (2 * rt * dim_p * a_bytes            # x tile (double-buffered)
                + 2 * rt * dim_p * a_bytes          # out tile
                + 2 * dim_p * ht * w_bytes          # W1 slice
                + 2 * ht * dim_p * w_bytes          # W2 slice
                + 2 * (ht + dim_p) * 4              # bias slices
                + (rt * dim_p * 4 if guess_scratch else 0)   # f32 accumulator
                + rt * ht * 4)                      # intermediate h (f32)

    # Shrink hidden_tile first (arithmetic intensity scales with row_tile), then row_tile.
    while _est(row_tile, hidden_tile) > vmem_budget and hidden_tile > 256:
        hidden_tile = _round_up(hidden_tile // 2, 128)
    while _est(row_tile, hidden_tile) > vmem_budget and row_tile > 64:
        row_tile = max(64, _round_up(row_tile // 2, 8))

    hid_p = _round_up(hidden, hidden_tile)
    n_hid_tiles = hid_p // hidden_tile

    # ---- one-time weight padding / casting (kept out of the per-call hot path) ----------
    w1p = w1 if (dim_p == dim and hid_p == hidden) else jnp.pad(
        w1, ((0, dim_p - dim), (0, hid_p - hidden)))
    w2p = w2 if (hid_p == hidden and dim_p == dim) else jnp.pad(
        w2, ((0, hid_p - hidden), (0, dim_p - dim)))
    b1p = (b1 if hid_p == hidden else jnp.pad(b1, (0, hid_p - hidden))).reshape(1, hid_p)
    b2p = (b2 if dim_p == dim else jnp.pad(b2, (0, dim_p - dim))).reshape(1, dim_p)
    if compute_dtype is not None:
        w1p = w1p.astype(compute_dtype)
        w2p = w2p.astype(compute_dtype)
    w1p, b1p, w2p, b2p = jax.block_until_ready((w1p, b1p, w2p, b2p))

    def apply(x):
        orig_shape = x.shape
        assert orig_shape[-1] == dim
        x2d = x.reshape(-1, dim)
        n_rows = x2d.shape[0]

        rows8 = _round_up(n_rows, 8)
        rt = min(row_tile, rows8)
        # v7x megacore: keep at least 2 row tiles so both TensorCores get work.
        if gen >= 7 and rows8 >= 16:
            rt = min(rt, _round_up(max(rows8 // 2, 8), 8))
        rt = _round_up(rt, 8)

        n_rows_p = _round_up(n_rows, rt)
        n_row_tiles = n_rows_p // rt

        xp = x2d if (n_rows_p == n_rows and dim_p == dim) else jnp.pad(
            x2d, ((0, n_rows_p - n_rows), (0, dim_p - dim)))

        out_dtype = x.dtype
        use_inplace = out_dtype == jnp.float32
        if use_inplace:
            kernel = functools.partial(_ffn_kernel_inplace, approx_gelu=approx_gelu)
            scratch = []
        else:
            kernel = functools.partial(_ffn_kernel_scratch, approx_gelu=approx_gelu)
            scratch = [pltpu.VMEM((rt, dim_p), jnp.float32)]

        a_b = jnp.dtype(xp.dtype).itemsize
        o_b = jnp.dtype(out_dtype).itemsize
        w_b = jnp.dtype(w1p.dtype).itemsize
        vmem_est = (2 * rt * dim_p * a_b
                    + 2 * rt * dim_p * o_b
                    + 2 * dim_p * hidden_tile * w_b
                    + 2 * hidden_tile * dim_p * w_b
                    + 2 * (hidden_tile + dim_p) * 4
                    + (0 if use_inplace else rt * dim_p * 4)
                    + rt * hidden_tile * 4)
        vmem_limit = min(vmem_budget, max(int(vmem_est * 1.4) + (4 << 20), 32 << 20))

        cost = pl.CostEstimate(
            flops=4 * n_rows * dim * hidden,            # two matmuls
            transcendentals=n_rows * hidden,            # GELU
            bytes_accessed=(xp.size * a_b + n_rows_p * dim_p * o_b
                            + n_row_tiles * (w1p.size + w2p.size) * w_b),
        )

        out = pl.pallas_call(
            kernel,
            out_shape=jax.ShapeDtypeStruct((n_rows_p, dim_p), out_dtype),
            grid_spec=pltpu.PrefetchScalarGridSpec(
                num_scalar_prefetch=0,
                grid=(n_row_tiles, n_hid_tiles),
                in_specs=[
                    pl.BlockSpec((rt, dim_p), lambda i, hk: (i, 0)),            # x rows
                    pl.BlockSpec((dim_p, hidden_tile), lambda i, hk: (0, hk)),  # W1 slice
                    pl.BlockSpec((1, hidden_tile), lambda i, hk: (0, hk)),      # b1 slice
                    pl.BlockSpec((hidden_tile, dim_p), lambda i, hk: (hk, 0)),  # W2 slice
                    pl.BlockSpec((1, dim_p), lambda i, hk: (0, 0)),             # b2
                ],
                out_specs=pl.BlockSpec((rt, dim_p), lambda i, hk: (i, 0)),
                scratch_shapes=scratch,
            ),
            compiler_params=pltpu.CompilerParams(
                dimension_semantics=("parallel", "arbitrary"),
                vmem_limit_bytes=vmem_limit,
            ),
            cost_estimate=cost,
        )(xp, w1p, b1p, w2p, b2p)

        return out[:n_rows, :dim].reshape(orig_shape)

    return apply


def feed_forward(x, w1, b1, w2, b2, **kwargs):
    """One-shot convenience wrapper (pads weights on every call; prefer make_feed_forward)."""
    return make_feed_forward(w1, b1, w2, b2, **kwargs)(x)


def init_params(key, dim, hidden_dim, dtype=jnp.float32):
    """Deterministic init mimicking torch.nn.Linear (uniform +/- 1/sqrt(fan_in))."""
    k1, k2, k3, k4 = jax.random.split(key, 4)
    lim1 = 1.0 / math.sqrt(dim)
    lim2 = 1.0 / math.sqrt(hidden_dim)
    # Stored transposed vs. PyTorch: W1 is (dim, hidden), W2 is (hidden, dim).
    w1 = jax.random.uniform(k1, (dim, hidden_dim), dtype, -lim1, lim1)
    b1 = jax.random.uniform(k2, (hidden_dim,), dtype, -lim1, lim1)
    w2 = jax.random.uniform(k3, (hidden_dim, dim), dtype, -lim2, lim2)
    b2 = jax.random.uniform(k4, (dim,), dtype, -lim2, lim2)
    return w1, b1, w2, b2


def feed_forward_ref(x, w1, b1, w2, b2):
    """Pure-JAX reference matching PyTorch semantics (Dropout p=0, exact GELU)."""
    h = x @ w1 + b1
    h = 0.5 * h * (1.0 + lax.erf(h / math.sqrt(2.0)))
    return h @ w2 + b2


if __name__ == "__main__":
    key = jax.random.PRNGKey(0)
    batch, seq, dim, hidden_dim = 2, 8, 32, 64

    kx, kp = jax.random.split(key)
    x = jax.random.normal(kx, (batch, seq, dim), jnp.float32)
    w1, b1, w2, b2 = init_params(kp, dim, hidden_dim)

    # Pad/stage the weights once, then run the kernel.
    ffn = make_feed_forward(w1, b1, w2, b2)
    out = ffn(x)
    out = jax.block_until_ready(out)

    ref = feed_forward_ref(x, w1, b1, w2, b2)
    assert out.shape == x.shape
    assert jnp.allclose(out, ref, atol=1e-4, rtol=1e-4), "mismatch vs reference"

    print("KERNEL_OK")
</pallas_src>

<mosaic_0001>
module attributes {stable_mosaic.version = 11 : i64} {
  func.func @_ffn_kernel_inplace(%arg0: i32, %arg1: i32, %arg2: memref<16x128xf32, #tpu.memory_space<vmem>>, %arg3: memref<128x128xf32, #tpu.memory_space<vmem>>, %arg4: memref<1x128xf32, #tpu.memory_space<vmem>>, %arg5: memref<128x128xf32, #tpu.memory_space<vmem>>, %arg6: memref<1x128xf32, #tpu.memory_space<vmem>>, %arg7: memref<16x128xf32, #tpu.memory_space<vmem>>) attributes {dimension_semantics = [#tpu.dimension_semantics<parallel>, #tpu.dimension_semantics<arbitrary>], iteration_bounds = array<i64: 1, 1>, scalar_prefetch = 0 : i64, scratch_operands = 0 : i64, tpu.core_type = #tpu.core_type<tc>, window_params = [{transform_indices = @transform_0, window_bounds = array<i64: 16, 128>}, {transform_indices = @transform_1, window_bounds = array<i64: 128, 128>}, {transform_indices = @transform_2, window_bounds = array<i64: 1, 128>}, {transform_indices = @transform_3, window_bounds = array<i64: 128, 128>}, {pipeline_mode = #tpu.pipeline_mode<synchronous>, transform_indices = @transform_4, window_bounds = array<i64: 1, 128>}, {transform_indices = @transform_5, window_bounds = array<i64: 16, 128>}]} {
    %c0 = arith.constant 0 : index
    %c0_0 = arith.constant 0 : index
    %0 = vector.load %arg2[%c0, %c0_0] : memref<16x128xf32, #tpu.memory_space<vmem>>, vector<16x128xf32>
    %c0_1 = arith.constant 0 : index
    %c0_2 = arith.constant 0 : index
    %1 = vector.load %arg3[%c0_1, %c0_2] : memref<128x128xf32, #tpu.memory_space<vmem>>, vector<128x128xf32>
    %cst = arith.constant dense<0.000000e+00> : vector<16x128xf32>
    %2 = tpu.matmul %0, %1, %cst {dimension_numbers = #tpu.dot_dimension_numbers<[1], [0], [0], [1], [0, 0, 1, 1], [], []>} : vector<16x128xf32>, vector<128x128xf32>, vector<16x128xf32> -> vector<16x128xf32>
    %c0_3 = arith.constant 0 : index
    %c0_4 = arith.constant 0 : index
    %3 = vector.load %arg4[%c0_3, %c0_4] : memref<1x128xf32, #tpu.memory_space<vmem>>, vector<1x128xf32>
    %4 = vector.broadcast %3 : vector<1x128xf32> to vector<16x128xf32>
    %5 = arith.addf %2, %4 : vector<16x128xf32>
    %cst_5 = arith.constant 5.000000e-01 : f32
    %6 = vector.broadcast %cst_5 : f32 to vector<16x128xf32>
    %7 = arith.mulf %6, %5 : vector<16x128xf32>
    %cst_6 = arith.constant 0.707106769 : f32
    %8 = vector.broadcast %cst_6 : f32 to vector<16x128xf32>
    %9 = arith.mulf %5, %8 : vector<16x128xf32>
    %10 = math.erf %9 : vector<16x128xf32>
    %cst_7 = arith.constant 1.000000e+00 : f32
    %11 = vector.broadcast %cst_7 : f32 to vector<16x128xf32>
    %12 = arith.addf %11, %10 : vector<16x128xf32>
    %13 = arith.mulf %7, %12 : vector<16x128xf32>
    %c0_8 = arith.constant 0 : index
    %c0_9 = arith.constant 0 : index
    %14 = vector.load %arg5[%c0_8, %c0_9] : memref<128x128xf32, #tpu.memory_space<vmem>>, vector<128x128xf32>
    %cst_10 = arith.constant dense<0.000000e+00> : vector<16x128xf32>
    %15 = tpu.matmul %13, %14, %cst_10 {dimension_numbers = #tpu.dot_dimension_numbers<[1], [0], [0], [1], [0, 0, 1, 1], [], []>} : vector<16x128xf32>, vector<128x128xf32>, vector<16x128xf32> -> vector<16x128xf32>
    %c0_i32 = arith.constant 0 : i32
    %16 = arith.cmpi eq, %arg1, %c0_i32 : i32
    %17 = arith.extui %16 : i1 to i32
    %c0_i32_11 = arith.constant 0 : i32
    %18 = arith.cmpi ne, %17, %c0_i32_11 : i32
    scf.if %18 {
      %c0_14 = arith.constant 0 : index
      %c0_15 = arith.constant 0 : index
      %22 = vector.load %arg6[%c0_14, %c0_15] : memref<1x128xf32, #tpu.memory_space<vmem>>, vector<1x128xf32>
      %23 = vector.broadcast %22 : vector<1x128xf32> to vector<16x128xf32>
      %24 = arith.addf %15, %23 : vector<16x128xf32>
      %c0_16 = arith.constant 0 : index
      %c0_17 = arith.constant 0 : index
      %25 = vector.load %arg7[%c0_16, %c0_17] : memref<16x128xf32, #tpu.memory_space<vmem>>, vector<16x128xf32>
      tpu.vector_store %arg7[%c0_16, %c0_17], %24 {strides = array<i32>} : memref<16x128xf32, #tpu.memory_space<vmem>>, vector<16x128xf32>,
    } else {
    }
    %c0_i32_12 = arith.constant 0 : i32
    %19 = arith.cmpi sgt, %arg1, %c0_i32_12 : i32
    %20 = arith.extui %19 : i1 to i32
    %c0_i32_13 = arith.constant 0 : i32
    %21 = arith.cmpi ne, %20, %c0_i32_13 : i32
    scf.if %21 {
      %c0_14 = arith.constant 0 : index
      %c0_15 = arith.constant 0 : index
      %22 = vector.load %arg7[%c0_14, %c0_15] : memref<16x128xf32, #tpu.memory_space<vmem>>, vector<16x128xf32>
      %23 = arith.addf %22, %15 : vector<16x128xf32>
      %c0_16 = arith.constant 0 : index
      %c0_17 = arith.constant 0 : index
      %24 = vector.load %arg7[%c0_16, %c0_17] : memref<16x128xf32, #tpu.memory_space<vmem>>, vector<16x128xf32>
      tpu.vector_store %arg7[%c0_16, %c0_17], %23 {strides = array<i32>} : memref<16x128xf32, #tpu.memory_space<vmem>>, vector<16x128xf32>,
    } else {
    }
    return
  }
  func.func @transform_0(%arg0: i32, %arg1: i32) -> (i32, i32) {
    %c0_i32 = arith.constant 0 : i32
    %c0_i32_0 = arith.constant 0 : i32
    return %arg0, %c0_i32 : i32, i32
  }
  func.func @transform_1(%arg0: i32, %arg1: i32) -> (i32, i32) {
    %c0_i32 = arith.constant 0 : i32
    %c0_i32_0 = arith.constant 0 : i32
    return %c0_i32, %arg1 : i32, i32
  }
  func.func @transform_2(%arg0: i32, %arg1: i32) -> (i32, i32) {
    %c0_i32 = arith.constant 0 : i32
    %c0_i32_0 = arith.constant 0 : i32
    return %c0_i32, %arg1 : i32, i32
  }
  func.func @transform_3(%arg0: i32, %arg1: i32) -> (i32, i32) {
    %c0_i32 = arith.constant 0 : i32
    %c0_i32_0 = arith.constant 0 : i32
    return %arg1, %c0_i32 : i32, i32
  }
  func.func @transform_4(%arg0: i32, %arg1: i32) -> (i32, i32) {
    %c0_i32 = arith.constant 0 : i32
    %c0_i32_0 = arith.constant 0 : i32
    %c0_i32_1 = arith.constant 0 : i32
    return %c0_i32, %c0_i32_0 : i32, i32
  }
  func.func @transform_5(%arg0: i32, %arg1: i32) -> (i32, i32) {
    %c0_i32 = arith.constant 0 : i32
    %c0_i32_0 = arith.constant 0 : i32
    return %arg0, %c0_i32 : i32, i32
  }
}

</mosaic_0001>

<bundles_post_ra>
// kernel: tpu_custom_call.1
= control target key start
LH: loop header
LB: loop body
LE: loop exit
PB: predicated region body
PF: predicated region fallthrough
CT: control target
= control target key end

     0   :  { %10 = vsyncpa [#allocation3], 0  ;;  %s691_s0 = inlined_call_operand.hbm [shape: f32[16,128], index: 0, kind: input, shape index: {}]   ;;  %s692_s1 = inlined_call_operand.hbm [shape: f32[128,128], index: 1, kind: input, shape index: {}]   ;;  %s693_s2 = inlined_call_operand.vmem [shape: f32[1,128], index: 2, kind: input, shape index: {}]   ;;  %s694_s3 = inlined_call_operand.hbm [shape: f32[128,128], index: 3, kind: input, shape index: {}]   ;;  %s695_s4 = inlined_call_operand.vmem [shape: f32[1,128], index: 4, kind: input, shape index: {}]   ;;  %s696_s5 = inlined_call_operand.hbm [shape: f32[16,128], index: 5, kind: output, shape index: {}]  }
   0x1   :  { %11 = vsyncpa [#allocation6], 0 }
   0x2   :  { %12 = vsyncpa [#allocation4], 0  ;;  %s582_s18 = smov [#allocation5]   ;;  %s583_s20 = smov [#allocation2]  }
   0x3   :  { %s30_s19 = sshll.u32 %s582_s18, 4  ;;  %s18_s21 = sshll.u32 %s583_s20, 4  ;;  %s31_s19 = int_to_ptr.vmem [resolvable:$true] %s30_s19  ;;  %s618_s21 = int_to_ptr.vmem [resolvable:$true] %s18_s21 }
   0x4   :  { %s488_s24 = scalar_lea.hbm %s692_s1, 2048 }
   0x5   :  { %p489_p0 = scmp.ne.s32.totalorder %s692_s1, %s488_s24  ;;  %p492_p1 = scmp.lt.u32.totalorder %s488_s24, %s692_s1 }
   0x7   :  { %p494_p2 = pnand %p492_p1, %p489_p0 }
   0x9   :  { %497 = shalt.err (!%p494_p2)
}
   0xa   :  { %s498_s29 = scalar_lea.vmem %s31_s19, 2048  ;;  %p503_p4 = scmp.lt.s32.totalorder %s31_s19, %s31_s19 }
   0xb   :  { %p499_p3 = scmp.ne.s32.totalorder %s31_s19, %s498_s29  ;;  %p504_p5 = scmp.lt.s32.totalorder %s498_s29, %s498_s29 }
   0xd   :  { %p505_p6 = por %p504_p5, %p503_p4 }
   0xf   :  { %p506_p7 = pnand %p505_p6, %p499_p3 }
  0x11   :  { %509 = shalt.err (!%p506_p7)
}
  0x12   :  { %s584_s30 = smov 128   ;;  %s585_s6 = smov 8  }
  0x13   :  { %36 = dma.hbm_to_vmem [thread:$0]  %s692_s1, 2048, %s31_s19, [#allocation6], %s584_s30, %s584_s30, %s585_s6  }
  0x14   :  { %s510_s11 = scalar_lea.hbm %s691_s0, 256 }
  0x15   :  { %p511_p8 = scmp.ne.s32.totalorder %s691_s0, %s510_s11  ;;  %p514_p9 = scmp.lt.u32.totalorder %s510_s11, %s691_s0 }
  0x17   :  { %p516_p10 = pnand %p514_p9, %p511_p8 }
  0x19   :  { %519 = shalt.err (!%p516_p10)
}
  0x1a   :  { %s520_s16 = scalar_lea.vmem %s618_s21, 256  ;;  %p525_p12 = scmp.lt.s32.totalorder %s618_s21, %s618_s21 }
  0x1b   :  { %p521_p11 = scmp.ne.s32.totalorder %s618_s21, %s520_s16  ;;  %p526_p13 = scmp.lt.s32.totalorder %s520_s16, %s520_s16 }
  0x1d   :  { %p527_p0 = por %p526_p13, %p525_p12 }
  0x1f   :  { %p528_p1 = pnand %p527_p0, %p521_p11 }
  0x21   :  { %531 = shalt.err (!%p528_p1)
}
  0x22   :  { %24 = dma.hbm_to_vmem [thread:$0]  %s691_s0, 256, %s618_s21, [#allocation3], %s584_s30, %s584_s30, %s585_s6  }
  0x23   :  { %s586_s18 = smov [#allocation7]   ;;  %s532_s23 = scalar_lea.hbm %s694_s3, 2048 }
  0x24   :  { %s44_s19 = sshll.u32 %s586_s18, 4  ;;  %p533_p2 = scmp.ne.s32.totalorder %s694_s3, %s532_s23  ;;  %s45_s19 = int_to_ptr.vmem [resolvable:$true] %s44_s19 }
  0x25   :  { %p536_p3 = scmp.lt.u32.totalorder %s532_s23, %s694_s3 }
  0x27   :  { %p538_p4 = pnand %p536_p3, %p533_p2 }
  0x29   :  { %541 = shalt.err (!%p538_p4)
}
  0x2a   :  { %s542_s28 = scalar_lea.vmem %s45_s19, 2048  ;;  %p547_p6 = scmp.lt.s32.totalorder %s45_s19, %s45_s19 }
  0x2b   :  { %p543_p5 = scmp.ne.s32.totalorder %s45_s19, %s542_s28  ;;  %p548_p7 = scmp.lt.s32.totalorder %s542_s28, %s542_s28 }
  0x2d   :  { %p549_p8 = por %p548_p7, %p547_p6 }
  0x2f   :  { %p550_p9 = pnand %p549_p8, %p543_p5 }
  0x31   :  { %553 = shalt.err (!%p550_p9)
}
  0x32   :  { %50 = dma.hbm_to_vmem [thread:$0]  %s694_s3, 2048, %s45_s19, [#allocation6], %s584_s30, %s584_s30, %s585_s6  }
  0x33   :  { %576 = dma.done.wait [#allocation3], 256  }
  0x34   :  { %577 = vsyncadd [#allocation3], 4294967040 }
  0x35   :  { %578 = dma.done.wait [#allocation6], 4096  }
  0x36   :  { %579 = vsyncadd [#allocation6], 4294963200  ;;  %v64_v0 = vld [vmem:[#allocation5] sm:$0xff]  ;;  %v65_v1 = vld [vmem:[#allocation5 + $0x8] sm:$0xff]  ;;  %s587_s8 = smov [#allocation8]  }
  0x37   :  { %v66_v2 = vld [vmem:[#allocation5 + $0x10] sm:$0xff]  ;;  %v414_v3 = vpack.c.bf16 %v65_v1, %v64_v0  ;;  %v67_v4 = vld [vmem:[#allocation5 + $0x18] sm:$0xff]  ;;  %v68_v6 = vld [vmem:[#allocation5 + $0x20] sm:$0xff]  ;;  %s293_s9 = sshll.u32 %s587_s8, 4  ;;  %s294_s9 = int_to_ptr.vmem [resolvable:$true] %s293_s9 }
  0x38   :  { %v418_v5 = vpack.c.bf16 %v67_v4, %v66_v2  ;;  %v69_v7 = vld [vmem:[#allocation5 + $0x28] sm:$0xff]  ;;  %v70_v9 = vld [vmem:[#allocation5 + $0x30] sm:$0xff]  ;;  %v71_v10 = vld [vmem:[#allocation5 + $0x38] sm:$0xff]  ;;  %s554_s10 = scalar_lea.vmem %s294_s9, 256  ;;  %p559_p11 = scmp.lt.s32.totalorder %s294_s9, %s294_s9 }
  0x39   :  { %415 = vmatprep.subr.bf16.mxu0 %v414_v3  ;;  %v422_v8 = vpack.c.bf16 %v69_v7, %v68_v6  ;;  %v62_v11 = vld [vmem:[#allocation2] sm:$0xff]  ;;  %v172_v12 = vld [vmem:[#allocation7] sm:$0xff]  ;;  %v173_v13 = vld [vmem:[#allocation7 + $0x8] sm:$0xff]  ;;  %v426_v20 = vpack.c.bf16 %v71_v10, %v70_v9  ;;  %p555_p10 = scmp.ne.s32.totalorder %s294_s9, %s554_s10  ;;  %p560_p12 = scmp.lt.s32.totalorder %s554_s10, %s554_s10 }
  0x3a   :  { %417 = vmatpush3.bf16.msra.mxu0 %v414_v3  ;;  %376 = vmatprep.mubr.f32.mxu0 %v62_v11  ;;  %v174_v14 = vld [vmem:[#allocation7 + $0x10] sm:$0xff]  ;;  %v446_v15 = vpack.c.bf16 %v173_v13, %v172_v12  ;;  %v175_v16 = vld [vmem:[#allocation7 + $0x18] sm:$0xff]  ;;  %v176_v18 = vld [vmem:[#allocation7 + $0x20] sm:$0xff] }
  0x3b   :  { %419 = vmatprep.subr.bf16.mxu0 %v418_v5  ;;  %v450_v17 = vpack.c.bf16 %v175_v16, %v174_v14  ;;  %v177_v19 = vld [vmem:[#allocation7 + $0x28] sm:$0xff]  ;;  %v72_v21 = vld [vmem:[#allocation5 + $0x40] sm:$0xff]  ;;  %v74_v25 = vld [vmem:[#allocation5 + $0x50] sm:$0xff]  ;;  %p561_p13 = por %p560_p12, %p559_p11 }
  0x3c   :  { %447 = vmatprep.subr.bf16.mxu1 %v446_v15  ;;  %v73_v22 = vld [vmem:[#allocation5 + $0x48] sm:$0xff]  ;;  %v454_v23 = vpack.c.bf16 %v177_v19, %v176_v18  ;;  %v75_v26 = vld [vmem:[#allocation5 + $0x58] sm:$0xff]  ;;  %v76_v28 = vld [vmem:[#allocation5 + $0x60] sm:$0xff] }
  0x3d   :  { %449 = vmatpush3.bf16.msra.mxu1 %v446_v15  ;;  %v430_v24 = vpack.c.bf16 %v73_v22, %v72_v21  ;;  %v434_v27 = vpack.c.bf16 %v75_v26, %v74_v25  ;;  %v77_v29 = vld [vmem:[#allocation5 + $0x68] sm:$0xff]  ;;  %v78_v31 = vld [vmem:[#allocation5 + $0x70] sm:$0xff]  ;;  %v79_v32 = vld [vmem:[#allocation5 + $0x78] sm:$0xff]  ;;  %p562_p0 = pnand %p561_p13, %p555_p10 }
  0x3e   :  { %421 = vmatpush3.bf16.msra.mxu0 %v418_v5  ;;  %451 = vmatprep.subr.bf16.mxu1 %v450_v17  ;;  %v438_v30 = vpack.c.bf16 %v77_v29, %v76_v28  ;;  %v442_v33 = vpack.c.bf16 %v79_v32, %v78_v31  ;;  %v63_v34 = vld [vmem:[#allocation2 + $0x8] sm:$0xff]  ;;  %v178_v35 = vld [vmem:[#allocation7 + $0x30] sm:$0xff]  ;;  %v180_v38 = vld [vmem:[#allocation7 + $0x40] sm:$0xff] }
  0x3f   :  { %423 = vmatprep.subr.bf16.mxu0 %v422_v8  ;;  %v179_v36 = vld [vmem:[#allocation7 + $0x38] sm:$0xff]  ;;  %v181_v39 = vld [vmem:[#allocation7 + $0x48] sm:$0xff]  ;;  %v182_v41 = vld [vmem:[#allocation7 + $0x50] sm:$0xff] }
  0x40   :  { %v458_v37 = vpack.c.bf16 %v179_v36, %v178_v35  ;;  %v462_v40 = vpack.c.bf16 %v181_v39, %v180_v38  ;;  %v183_v42 = vld [vmem:[#allocation7 + $0x58] sm:$0xff]  ;;  %v184_v44 = vld [vmem:[#allocation7 + $0x60] sm:$0xff]  ;;  %v185_v45 = vld [vmem:[#allocation7 + $0x68] sm:$0xff] }
  0x41   :  { %453 = vmatpush3.bf16.msra.mxu1 %v450_v17  ;;  %v466_v43 = vpack.c.bf16 %v183_v42, %v182_v41  ;;  %v470_v46 = vpack.c.bf16 %v185_v45, %v184_v44  ;;  %v186_v47 = vld [vmem:[#allocation7 + $0x70] sm:$0xff]  ;;  %v187_v48 = vld [vmem:[#allocation7 + $0x78] sm:$0xff] }
  0x42   :  { %425 = vmatpush3.bf16.msra.mxu0 %v422_v8  ;;  %455 = vmatprep.subr.bf16.mxu1 %v454_v23  ;;  %v474_v49 = vpack.c.bf16 %v187_v48, %v186_v47  ;;  %v306_v50 = vld [vmem:[%s693_s2] ss:$0 sm:$0xff] }
  0x43   :  { %427 = vmatprep.subr.bf16.mxu0 %v426_v20  ;;  %v307_v1 = vld [vmem:[%s695_s4] ss:$0 sm:$0xff] }
  0x45   :  { %457 = vmatpush3.bf16.msra.mxu1 %v454_v23 }
  0x46   :  { %429 = vmatpush3.bf16.msra.mxu0 %v426_v20  ;;  %459 = vmatprep.subr.bf16.mxu1 %v458_v37 }
  0x47   :  { %431 = vmatprep.subr.bf16.mxu0 %v430_v24 }
  0x49   :  { %461 = vmatpush3.bf16.msra.mxu1 %v458_v37 }
  0x4a   :  { %433 = vmatpush3.bf16.msra.mxu0 %v430_v24  ;;  %463 = vmatprep.subr.bf16.mxu1 %v462_v40 }
  0x4b   :  { %435 = vmatprep.subr.bf16.mxu0 %v434_v27 }
  0x4d   :  { %465 = vmatpush3.bf16.msra.mxu1 %v462_v40 }
  0x4e   :  { %437 = vmatpush3.bf16.msra.mxu0 %v434_v27  ;;  %467 = vmatprep.subr.bf16.mxu1 %v466_v43 }
  0x4f   :  { %439 = vmatprep.subr.bf16.mxu0 %v438_v30 }
  0x51   :  { %469 = vmatpush3.bf16.msra.mxu1 %v466_v43 }
  0x52   :  { %441 = vmatpush3.bf16.msra.mxu0 %v438_v30  ;;  %471 = vmatprep.subr.bf16.mxu1 %v470_v46 }
  0x53   :  { %443 = vmatprep.subr.bf16.mxu0 %v442_v33 }
  0x55   :  { %473 = vmatpush3.bf16.msra.mxu1 %v470_v46 }
  0x56   :  { %445 = vmatpush3.bf16.msra.mxu0 %v442_v33  ;;  %475 = vmatprep.subr.bf16.mxu1 %v474_v49 }
  0x59   :  { %377 = vmatmul.mubr.f32.vlgmr.msra.gmra.mrb[0].mxu0 %v63_v34  ;;  %477 = vmatpush3.bf16.msra.mxu1 %v474_v49 }
 0x12c   :  { %v378_v51 = vpop.f32.mrb[0].mxu0 }
 0x12d   :  { %v159_v52 = vadd.f32 %v378_v51, %v306_v50  ;;  %v153_v53 = vpop.f32.mrb[1].mxu0 }
 0x12e   :  { %v154_v54 = vadd.f32 %v306_v50, %v153_v53 }
 0x12f   :  { %v165_v55 = vmul.f32 0.70710677, %v159_v52  ;;  %v163_v62 = vmul.f32 0.5, %v159_v52 }
 0x130   :  { %v164_v56 = vmul.f32 0.70710677, %v154_v54  ;;  %v162_v60 = vmul.f32 0.5, %v154_v54 }
 0x131   :  { %484 = verf.f32 %v165_v55 }
 0x132   :  { %486 = verf.f32 %v164_v56 }
 0x13b   :  { %v485_v57 = vpop.eup %484 }
 0x13c   :  { %v487_v58 = vpop.eup %486  ;;  %v169_v59 = vadd.f32 1.0, %v485_v57 }
 0x13d   :  { %v168_v61 = vadd.f32 1.0, %v487_v58 }
 0x13e   :  { %v171_v0 = vmul.f32 %v169_v59, %v163_v62 }
 0x13f   :  { %v170_v63 = vmul.f32 %v168_v61, %v162_v60 }
 0x141   :  { %411 = vmatprep.mubr.f32.mxu1 %v170_v63 }
 0x142   :  { %412 = vmatmul.mubr.f32.vlgmr.msra.gmra.mrb[0].mxu1 %v171_v0 }
 0x215   :  { %v413_v2 = vpop.f32.mrb[0].mxu1 }
 0x216   :  { %v275_v3 = vadd.f32 %v413_v2, %v307_v1  ;;  %v254_v4 = vpop.f32.mrb[1].mxu1 }
 0x217   :  { %v274_v5 = vadd.f32 %v307_v1, %v254_v4 }
 0x218   :  { %277 = vst [vmem:[#allocation8 + $0x8] sm:$0xff] %v275_v3 }
 0x219   :  { %276 = vst [vmem:[#allocation8] sm:$0xff] %v274_v5 }
 0x21a   :  { %565 = shalt.err (!%p562_p0)
}
 0x21b   :  { %s566_s4 = scalar_lea.hbm %s696_s5, 256 }
 0x21c   :  { %p567_p1 = scmp.ne.s32.totalorder %s696_s5, %s566_s4  ;;  %p570_p2 = scmp.lt.u32.totalorder %s566_s4, %s696_s5 }
 0x21e   :  { %p572_p3 = pnand %p570_p2, %p567_p1 }
 0x220   :  { %575 = shalt.err (!%p572_p3)
}
 0x221   :  { %299 = dma.vmem_to_hbm [thread:$0]  %s294_s9, 256, %s696_s5, [#allocation4], %s584_s30, %s584_s30, %s585_s6  }
 0x222   :  { %580 = dma.done.wait [#allocation4], 256  }
 0x223   :  { %581 = vsyncadd [#allocation4], 4294967040 }
 0x224   :  { %303 = vsyncpa [#allocation3], 1 }
 0x225   :  { %304 = vsyncpa [#allocation6], 1 }
 0x226   :  { %305 = vsyncpa [#allocation4], 1 }

</bundles_post_ra>
